<compile_context>
chip_gen: v7x
topology: tpu7x:2x2x1
jax: 0.10.0
libtpu: 0.0.40
codegen_flags: <defaults>
</compile_context>

<pallas_src>
import math
import re

import jax
import jax.numpy as jnp
import numpy as np
from jax.experimental import pallas as pl
from jax.experimental.pallas import tpu as pltpu


# ---------------------------------------------------------------------------
# Kernels
# ---------------------------------------------------------------------------
def _softmax_kernel(x_ref, o_ref):
    """Numerically stable softmax over the last (lane) axis, computed in f32."""
    x = x_ref[...].astype(jnp.float32)
    m = jnp.max(x, axis=-1, keepdims=True)      # XLU cross-lane reduce
    e = jnp.exp(x - m)                          # EUP
    s = jnp.sum(e, axis=-1, keepdims=True)      # XLU
    # TODO(synk): for 128 < D <= ~256 on v7x/v6e the row sum could also be moved
    # onto the idle MXU (e @ ones((D, D))) to relieve the vector-extended slot.
    inv = pl.reciprocal(s, approx=False)        # exact; free once mem-bound
    o_ref[...] = (e * inv).astype(o_ref.dtype)


def _softmax_packed_kernel(x_ref, seg_ref, o_ref):
    """Small-D path: each 128-lane row holds g = 128//D original rows.

    * Stability shift: max over the whole packed row. It is constant within
      every D-lane segment (so the softmax value is mathematically unchanged)
      and upper-bounds each segment max (so exp never overflows).
      TODO(synk): pathological inputs whose co-packed rows differ by >~80 in
      magnitude can underflow an entire segment; an exact per-segment max
      (rolling-window max + masked MXU broadcast) would cover that case.
    * Segment sums: one MXU matmul against a block-diagonal ones matrix; every
      lane of the result already holds its own segment's sum, so the broadcast
      of 1/sum is free and the XLU is not used for the reduction at all.
    """
    x = x_ref[...].astype(jnp.float32)
    m = jnp.max(x, axis=-1, keepdims=True)
    e = jnp.exp(x - m)
    s = jnp.dot(e, seg_ref[...],
                preferred_element_type=jnp.float32,
                precision=jax.lax.Precision.HIGHEST)   # exact f32 segment sums
    inv = pl.reciprocal(s, approx=False)
    o_ref[...] = (e * inv).astype(o_ref.dtype)


# ---------------------------------------------------------------------------
# Wrapper helpers
# ---------------------------------------------------------------------------
def _round_up(v, m):
    return ((v + m - 1) // m) * m


def _cdiv(a, b):
    return (a + b - 1) // b


def _tpu_generation():
    """Best-effort TPU generation (5, 6, 7, ...); 0 if unknown."""
    try:
        kind = jax.devices()[0].device_kind.lower()
    except Exception:
        return 0
    m = re.search(r"(\d+)", kind)
    return int(m.group(1)) if m else 0


def _chip_config(gen):
    """Per-generation HBM bytes per grid step, VMEM footprint budget, explicit
    scoped-VMEM limit, and whether to shard the row grid across TensorCores."""
    if gen >= 7:   # v7x: 3.2 TB/s HBM, 64 MiB VMEM per TC, 2 TCs/chip
        return dict(block_bytes=4 << 20, vmem_budget=40 << 20,
                    vmem_limit=48 << 20, core_parallel=True)
    if gen == 6:   # v6e: 1.4 TB/s HBM, 128 MiB VMEM (32 MiB scoped default)
        return dict(block_bytes=4 << 20, vmem_budget=56 << 20,
                    vmem_limit=64 << 20, core_parallel=False)
    if gen == 5:   # v5e: ~0.8 TB/s HBM, 16 MiB scoped default
        return dict(block_bytes=2 << 20, vmem_budget=28 << 20,
                    vmem_limit=32 << 20, core_parallel=False)
    # Unknown / older: stay within a 16 MiB scoped default, no override.
    return dict(block_bytes=2 << 20, vmem_budget=12 << 20,
                vmem_limit=None, core_parallel=False)


def _choose_block_rows(total_rows, width, itemsize, cfg):
    """Byte-targeted row block, dtype-aware sublane rounding, VMEM clamped."""
    sub = max(8, 32 // itemsize)                  # 8 f32 / 16 bf16 / 32 int8
    per_row_hbm = width * itemsize
    per_row_vmem = width * (4 * itemsize + 2 * 4)  # 4 pipelined bufs + 2 f32 temps
    br = cfg["block_bytes"] // per_row_hbm
    br = min(br, cfg["vmem_budget"] // per_row_vmem)
    br = max(sub, (br // sub) * sub)
    rows_padded = _round_up(total_rows, sub)
    br = min(br, rows_padded)
    if cfg["core_parallel"]:
        # Keep >= ~2*cores + pipeline-ramp blocks so both v7x TCs stay busy.
        min_blocks = 6
        if _cdiv(total_rows, br) < min_blocks and rows_padded >= min_blocks * sub:
            br = max(sub, _round_up(_cdiv(rows_padded, min_blocks), sub))
    return br


def _compiler_params(cfg):
    if cfg["core_parallel"]:
        # Share the (independent-rows) grid across both v7x TensorCores.
        dims = (getattr(pltpu, "CORE_PARALLEL", "parallel"),)
    else:
        dims = ("parallel",)
    kwargs = dict(dimension_semantics=dims)
    if cfg["vmem_limit"] is not None:
        kwargs["vmem_limit_bytes"] = cfg["vmem_limit"]
    return pltpu.CompilerParams(**kwargs)


def _segment_matrix(d):
    """(128,128) f32 block-diagonal ones: `e @ M` puts each D-lane segment's
    sum on every lane of that segment."""
    g = 128 // d
    return jnp.asarray(np.kron(np.eye(g, dtype=np.float32),
                               np.ones((d, d), dtype=np.float32)))


# ---------------------------------------------------------------------------
# Forward
# ---------------------------------------------------------------------------
@jax.jit
def softmax_forward(x):
    """Pallas equivalent of torch.nn.Softmax(dim=-1)(x) for any shape/dtype."""
    orig_shape = x.shape
    d = int(orig_shape[-1])
    rows = int(math.prod(orig_shape[:-1])) if len(orig_shape) > 1 else 1
    itemsize = jnp.dtype(x.dtype).itemsize

    cfg = _chip_config(_tpu_generation())
    compiler_params = _compiler_params(cfg)
    n = rows * d

    # ---- Small-D packed path (D < 128, D | 128, rows divisible by 128//D) ----
    packable = (0 < d < 128) and (128 % d == 0) and (rows % (128 // d) == 0)
    if packable:
        g = 128 // d
        prows = rows // g
        x2 = x.reshape(prows, 128)                 # pure reshape (contiguous)
        block_rows = _choose_block_rows(prows, 128, itemsize, cfg)
        cost = pl.CostEstimate(flops=5 * n + 2 * prows * 128 * 128,
                               transcendentals=n,
                               bytes_accessed=2 * n * itemsize)
        out2 = pl.pallas_call(
            _softmax_packed_kernel,
            out_shape=jax.ShapeDtypeStruct((prows, 128), x.dtype),
            grid=(pl.cdiv(prows, block_rows),),
            in_specs=[pl.BlockSpec((block_rows, 128), lambda i: (i, 0)),
                      pl.BlockSpec((128, 128), lambda i: (0, 0))],
            out_specs=pl.BlockSpec((block_rows, 128), lambda i: (i, 0)),
            compiler_params=compiler_params,
            cost_estimate=cost,
        )(x2, _segment_matrix(d))
        return out2.reshape(orig_shape)

    # ---- General path: full-D blocks so the reduction never crosses a tile ----
    # TODO(synk): very large D (a minimum `sub`-row full-D block exceeding the
    # VMEM budget, tightest on v7x's 64 MiB) needs an online-softmax path over
    # a second "arbitrary" D-chunk grid axis; not implemented here.
    x2 = x.reshape(rows, d)
    block_rows = _choose_block_rows(rows, d, itemsize, cfg)
    cost = pl.CostEstimate(flops=5 * n, transcendentals=n,
                           bytes_accessed=2 * n * itemsize)
    out2 = pl.pallas_call(
        _softmax_kernel,
        out_shape=jax.ShapeDtypeStruct((rows, d), x.dtype),
        grid=(pl.cdiv(rows, block_rows),),
        in_specs=[pl.BlockSpec((block_rows, d), lambda i: (i, 0))],
        out_specs=pl.BlockSpec((block_rows, d), lambda i: (i, 0)),
        compiler_params=compiler_params,
        cost_estimate=cost,
    )(x2)
    return out2.reshape(orig_shape)


# ---------------------------------------------------------------------------
# Self-test
# ---------------------------------------------------------------------------
if __name__ == "__main__":
    key = jax.random.PRNGKey(0)
    k1, k2, k3, k4 = jax.random.split(key, 4)

    cases = [
        # Module-sized NCHW input, D=16 -> packed small-D path (g=8).
        (jax.random.normal(k1, (2, 4, 16, 16), dtype=jnp.float32), 1e-5, 1e-5),
        # Ragged rows (15) and ragged D (200) -> general path, partial blocks.
        (jax.random.normal(k2, (3, 5, 200), dtype=jnp.float32) * 4.0, 1e-5, 1e-5),
        # Multi-block grid on the general path (partial tail block).
        (jax.random.normal(k3, (16, 144, 1024), dtype=jnp.float32), 1e-5, 1e-5),
        # bf16 input -> 16-row sublane rounding, f32 internal math.
        (jax.random.normal(k4, (2, 8, 384), dtype=jnp.bfloat16), 1e-2, 1e-2),
    ]

    for x, rtol, atol in cases:
        out = jax.block_until_ready(softmax_forward(x))
        ref = jax.nn.softmax(x.astype(jnp.float32), axis=-1).astype(x.dtype)
        np.testing.assert_allclose(
            np.asarray(out.astype(jnp.float32)),
            np.asarray(ref.astype(jnp.float32)),
            rtol=rtol, atol=atol,
        )

    print("KERNEL_OK")
</pallas_src>

<mosaic_0001>
module attributes {stable_mosaic.version = 11 : i64} {
  func.func @_softmax_packed_kernel(%arg0: i32, %arg1: memref<16x128xf32, #tpu.memory_space<vmem>>, %arg2: memref<128x128xf32, #tpu.memory_space<vmem>>, %arg3: memref<16x128xf32, #tpu.memory_space<vmem>>) attributes {dimension_semantics = [#tpu.dimension_semantics<parallel>], iteration_bounds = array<i64: 1>, scalar_prefetch = 0 : i64, scratch_operands = 0 : i64, tpu.core_type = #tpu.core_type<tc>, window_params = [{transform_indices = @transform_0, window_bounds = array<i64: 16, 128>}, {pipeline_mode = #tpu.pipeline_mode<synchronous>, transform_indices = @transform_1, window_bounds = array<i64: 128, 128>}, {transform_indices = @transform_2, window_bounds = array<i64: 16, 128>}]} {
    %c0 = arith.constant 0 : index
    %c0_0 = arith.constant 0 : index
    %0 = vector.load %arg1[%c0, %c0_0] : memref<16x128xf32, #tpu.memory_space<vmem>>, vector<16x128xf32>
    %cst = arith.constant dense<0xFF800000> : vector<16xf32>
    %1 = vector.multi_reduction <maximumf>, %0, %cst [1] : vector<16x128xf32> to vector<16xf32>
    %2 = vector.shape_cast %1 : vector<16xf32> to vector<16x1xf32>
    %3 = vector.broadcast %2 : vector<16x1xf32> to vector<16x128xf32>
    %4 = arith.subf %0, %3 : vector<16x128xf32>
    %5 = math.exp %4 : vector<16x128xf32>
    %c0_1 = arith.constant 0 : index
    %c0_2 = arith.constant 0 : index
    %6 = vector.load %arg2[%c0_1, %c0_2] : memref<128x128xf32, #tpu.memory_space<vmem>>, vector<128x128xf32>
    %cst_3 = arith.constant dense<0.000000e+00> : vector<16x128xf32>
    %7 = tpu.matmul %5, %6, %cst_3 {dimension_numbers = #tpu.dot_dimension_numbers<[1], [0], [0], [1], [0, 0, 1, 1], [], []>, precision = #tpu.contract_precision<fp32>} : vector<16x128xf32>, vector<128x128xf32>, vector<16x128xf32> -> vector<16x128xf32>
    %8 = tpu.reciprocal %7 : vector<16x128xf32> -> vector<16x128xf32>
    %9 = arith.mulf %5, %8 : vector<16x128xf32>
    %c0_4 = arith.constant 0 : index
    %c0_5 = arith.constant 0 : index
    %10 = vector.load %arg3[%c0_4, %c0_5] : memref<16x128xf32, #tpu.memory_space<vmem>>, vector<16x128xf32>
    tpu.vector_store %arg3[%c0_4, %c0_5], %9 {strides = array<i32>} : memref<16x128xf32, #tpu.memory_space<vmem>>, vector<16x128xf32>,
    return
  }
  func.func @transform_0(%arg0: i32) -> (i32, i32) {
    %c0_i32 = arith.constant 0 : i32
    %c0_i32_0 = arith.constant 0 : i32
    return %arg0, %c0_i32 : i32, i32
  }
  func.func @transform_1(%arg0: i32) -> (i32, i32) {
    %c0_i32 = arith.constant 0 : i32
    %c0_i32_0 = arith.constant 0 : i32
    %c0_i32_1 = arith.constant 0 : i32
    return %c0_i32, %c0_i32_0 : i32, i32
  }
  func.func @transform_2(%arg0: i32) -> (i32, i32) {
    %c0_i32 = arith.constant 0 : i32
    %c0_i32_0 = arith.constant 0 : i32
    return %arg0, %c0_i32 : i32, i32
  }
}

</mosaic_0001>

<bundles_post_ra>
// kernel: softmax_forward.1
= control target key start
LH: loop header
LB: loop body
LE: loop exit
PB: predicated region body
PF: predicated region fallthrough
CT: control target
= control target key end

     0   :  { %s1683_s0 = inlined_call_operand.vmem [shape: f32[16,128], index: 0, kind: input, shape index: {}]   ;;  %s1684_s1 = inlined_call_operand.vmem [shape: f32[128,128], index: 1, kind: input, shape index: {}]   ;;  %s1685_s2 = inlined_call_operand.vmem [shape: f32[16,128], index: 2, kind: output, shape index: {}]  }
   0x1   :  { %v1279_v0 = vld [vmem:[%s1683_s0] sm:$0xff]  ;;  %v1290_v2 = vld [vmem:[%s1684_s1 + $0x8] sm:$0xff]  ;;  %v1296_v4 = vld [vmem:[%s1684_s1 + $0x10] sm:$0xff] }
   0x2   :  { %v1284_v1 = vld [vmem:[%s1684_s1] sm:$0xff]  ;;  %13 = vmax.xlane.f32.xlu0 %v1279_v0  ;;  %v1301_v5 = vld [vmem:[%s1684_s1 + $0x18] sm:$0xff]  ;;  %v1306_v6 = vld [vmem:[%s1683_s0 + $0x8] sm:$0xff]  ;;  %v43_v7 = vand.u32 4294901760, %v1290_v2  ;;  %v46_v8 = vand.u32 4294901760, %v1296_v4 }
   0x3   :  { %v40_v3 = vand.u32 4294901760, %v1284_v1  ;;  %v49_v9 = vand.u32 4294901760, %v1301_v5  ;;  %v1333_v12 = vld [vmem:[%s1684_s1 + $0x20] sm:$0xff]  ;;  %v1338_v13 = vld [vmem:[%s1684_s1 + $0x28] sm:$0xff]  ;;  %v1353_v17 = vld [vmem:[%s1684_s1 + $0x30] sm:$0xff] }
   0x4   :  { %v52_v14 = vand.u32 4294901760, %v1333_v12  ;;  %v55_v15 = vand.u32 4294901760, %v1338_v13  ;;  %v1358_v18 = vld [vmem:[%s1684_s1 + $0x38] sm:$0xff]  ;;  %v58_v19 = vand.u32 4294901760, %v1353_v17  ;;  %v1375_v22 = vld [vmem:[%s1684_s1 + $0x40] sm:$0xff]  ;;  %v1380_v23 = vld [vmem:[%s1684_s1 + $0x48] sm:$0xff]  ;;  %v1470_v43 = vsub.f32 %v1290_v2, %v43_v7 }
   0x5   :  { %v1315_v10 = vpack.c.bf16 %v43_v7, %v40_v3  ;;  %v1321_v11 = vpack.c.bf16 %v49_v9, %v46_v8  ;;  %v61_v20 = vand.u32 4294901760, %v1358_v18  ;;  %v64_v24 = vand.u32 4294901760, %v1375_v22  ;;  %v1397_v27 = vld [vmem:[%s1684_s1 + $0x50] sm:$0xff]  ;;  %v1402_v28 = vld [vmem:[%s1684_s1 + $0x58] sm:$0xff]  ;;  %v1411_v31 = vld [vmem:[%s1684_s1 + $0x60] sm:$0xff] }
   0x6   :  { %15 = vmax.xlane.f32.xlu0 %v1306_v6  ;;  %v1348_v16 = vpack.c.bf16 %v55_v15, %v52_v14  ;;  %v67_v25 = vand.u32 4294901760, %v1380_v23  ;;  %v70_v29 = vand.u32 4294901760, %v1397_v27  ;;  %v73_v30 = vand.u32 4294901760, %v1402_v28  ;;  %v1416_v32 = vld [vmem:[%s1684_s1 + $0x68] sm:$0xff]  ;;  %v1421_v33 = vld [vmem:[%s1684_s1 + $0x70] sm:$0xff]  ;;  %v1430_v36 = vld [vmem:[%s1684_s1 + $0x78] sm:$0xff] }
   0x7   :  { %1148 = vmatprep.subr.bf16.mxu0 %v1315_v10  ;;  %1052 = vmatprep.subr.bf16.mxu1 %v1315_v10  ;;  %v1370_v21 = vpack.c.bf16 %v61_v20, %v58_v19  ;;  %v76_v34 = vand.u32 4294901760, %v1411_v31  ;;  %v79_v35 = vand.u32 4294901760, %v1416_v32  ;;  %v82_v38 = vand.u32 4294901760, %v1421_v33 }
   0x8   :  { %1150 = vmatpush3.bf16.msra.mxu0 %v1315_v10  ;;  %1054 = vmatpush3.bf16.msra.mxu1 %v1315_v10  ;;  %v1392_v26 = vpack.c.bf16 %v67_v25, %v64_v24  ;;  %v1436_v37 = vpack.c.bf16 %v73_v30, %v70_v29  ;;  %v85_v39 = vand.u32 4294901760, %v1430_v36  ;;  %v1465_v42 = vsub.f32 %v1284_v1, %v40_v3 }
   0x9   :  { %1152 = vmatprep.subr.bf16.mxu0 %v1321_v11  ;;  %1056 = vmatprep.subr.bf16.mxu1 %v1321_v11  ;;  %v1444_v40 = vpack.c.bf16 %v79_v35, %v76_v34  ;;  %v150_v45 = vand.u32 4294901760, %v1470_v43  ;;  %v1483_v49 = vsub.f32 %v1296_v4, %v46_v8  ;;  %v1488_v50 = vsub.f32 %v1301_v5, %v49_v9 }
   0xa   :  { %v1456_v41 = vpack.c.bf16 %v85_v39, %v82_v38  ;;  %v143_v44 = vand.u32 4294901760, %v1465_v42  ;;  %v1502_v59 = vsub.f32 %v1333_v12, %v52_v14  ;;  %v1507_v60 = vsub.f32 %v1338_v13, %v55_v15 }
   0xb   :  { %v151_v48 = vsub.f32 %v1470_v43, %v150_v45  ;;  %v157_v53 = vand.u32 4294901760, %v1483_v49  ;;  %v164_v54 = vand.u32 4294901760, %v1488_v50  ;;  %v184_v3 = vsub.f32 %v1353_v17, %v58_v19 }
   0xc   :  { %1154 = vmatpush3.bf16.msra.mxu0 %v1321_v11  ;;  %1058 = vmatpush3.bf16.msra.mxu1 %v1321_v11  ;;  %v1476_v46 = vpack.c.bf16 %v150_v45, %v143_v44  ;;  %v144_v47 = vsub.f32 %v1465_v42, %v143_v44  ;;  %v171_v63 = vand.u32 4294901760, %v1502_v59  ;;  %v178_v1 = vand.u32 4294901760, %v1507_v60 }
   0xd   :  { %1156 = vmatprep.subr.bf16.mxu0 %v1348_v16  ;;  %1060 = vmatprep.subr.bf16.mxu1 %v1348_v16  ;;  %v152_v52 = vand.u32 4294901760, %v151_v48  ;;  %v1495_v56 = vpack.c.bf16 %v164_v54, %v157_v53  ;;  %v158_v57 = vsub.f32 %v1483_v49, %v157_v53  ;;  %v165_v58 = vsub.f32 %v1488_v50, %v164_v54 }
   0xe   :  { %v145_v51 = vand.u32 4294901760, %v144_v47  ;;  %v191_v4 = vsub.f32 %v1358_v18, %v61_v20  ;;  %v1520_v5 = vpack.c.bf16 %v178_v1, %v171_v63  ;;  %v172_v7 = vsub.f32 %v1502_v59, %v171_v63 }
   0xf   :  { %v159_v61 = vand.u32 4294901760, %v158_v57  ;;  %v166_v62 = vand.u32 4294901760, %v165_v58  ;;  %v179_v8 = vsub.f32 %v1507_v60, %v178_v1  ;;  %v185_v9 = vand.u32 4294901760, %v184_v3 }
  0x10   :  { %1158 = vmatpush3.bf16.msra.mxu0 %v1348_v16  ;;  %1062 = vmatpush3.bf16.msra.mxu1 %v1348_v16  ;;  %v1493_v55 = vpack.c.bf16 %v152_v52, %v145_v51  ;;  %v192_v12 = vand.u32 4294901760, %v191_v4  ;;  %v173_v13 = vand.u32 4294901760, %v172_v7  ;;  %v198_v17 = vsub.f32 %v1375_v22, %v64_v24 }
  0x11   :  { %1160 = vmatprep.subr.bf16.mxu0 %v1370_v21  ;;  %1064 = vmatprep.subr.bf16.mxu1 %v1370_v21  ;;  %v1512_v2 = vpack.c.bf16 %v166_v62, %v159_v61  ;;  %v180_v14 = vand.u32 4294901760, %v179_v8  ;;  %v186_v44 = vsub.f32 %v184_v3, %v185_v9  ;;  %v205_v18 = vsub.f32 %v1380_v23, %v67_v25 }
  0x12   :  { %v1524_v15 = vpack.c.bf16 %v192_v12, %v185_v9  ;;  %v193_v45 = vsub.f32 %v191_v4, %v192_v12  ;;  %v199_v48 = vand.u32 4294901760, %v198_v17  ;;  %v212_v54 = vsub.f32 %v1397_v27, %v70_v29 }
  0x13   :  { %v1529_v19 = vpack.c.bf16 %v180_v14, %v173_v13  ;;  %v187_v20 = vand.u32 4294901760, %v186_v44  ;;  %v206_v51 = vand.u32 4294901760, %v205_v18  ;;  %v219_v22 = vsub.f32 %v1402_v28, %v73_v30 }
  0x14   :  { %1162 = vmatpush3.bf16.msra.mxu0 %v1370_v21  ;;  %1066 = vmatpush3.bf16.msra.mxu1 %v1370_v21  ;;  %v194_v47 = vand.u32 4294901760, %v193_v45  ;;  %v200_v53 = vsub.f32 %v198_v17, %v199_v48  ;;  %v213_v23 = vand.u32 4294901760, %v212_v54  ;;  %v226_v7 = vsub.f32 %v1411_v31, %v76_v34 }
  0x15   :  { %1164 = vmatprep.subr.bf16.mxu0 %v1392_v26  ;;  %1068 = vmatprep.subr.bf16.mxu1 %v1392_v26  ;;  %v1542_v24 = vpack.c.bf16 %v206_v51, %v199_v48  ;;  %v207_v57 = vsub.f32 %v205_v18, %v206_v51  ;;  %v220_v25 = vand.u32 4294901760, %v219_v22  ;;  %v233_v28 = vsub.f32 %v1416_v32, %v79_v35 }
  0x16   :  { %v1534_v52 = vpack.c.bf16 %v194_v47, %v187_v20  ;;  %v201_v58 = vand.u32 4294901760, %v200_v53  ;;  %v214_v63 = vsub.f32 %v212_v54, %v213_v23  ;;  %v227_v8 = vand.u32 4294901760, %v226_v7 }
  0x17   :  { %v208_v61 = vand.u32 4294901760, %v207_v57  ;;  %v1544_v62 = vpack.c.bf16 %v220_v25, %v213_v23  ;;  %v221_v1 = vsub.f32 %v219_v22, %v220_v25  ;;  %v234_v9 = vand.u32 4294901760, %v233_v28 }
  0x18   :  { %1166 = vmatpush3.bf16.msra.mxu0 %v1392_v26  ;;  %1070 = vmatpush3.bf16.msra.mxu1 %v1392_v26  ;;  %v215_v29 = vand.u32 4294901760, %v214_v63  ;;  %v228_v13 = vsub.f32 %v226_v7, %v227_v8  ;;  %v240_v14 = vsub.f32 %v1421_v33, %v82_v38  ;;  %v247_v31 = vsub.f32 %v1430_v36, %v85_v39 }
  0x19   :  { %1168 = vmatprep.subr.bf16.mxu0 %v1436_v37  ;;  %1072 = vmatprep.subr.bf16.mxu1 %v1436_v37  ;;  %v1549_v27 = vpack.c.bf16 %v208_v61, %v201_v58  ;;  %v222_v30 = vand.u32 4294901760, %v221_v1  ;;  %v1562_v34 = vpack.c.bf16 %v234_v9, %v227_v8  ;;  %v235_v44 = vsub.f32 %v233_v28, %v234_v9 }
  0x1a   :  { %v229_v45 = vand.u32 4294901760, %v228_v13  ;;  %v241_v32 = vand.u32 4294901760, %v240_v14  ;;  %v248_v35 = vand.u32 4294901760, %v247_v31  ;;  %v1572_v36 = vpack.c.bf16 %v1470_v43, %v1465_v42 }
  0x1b   :  { %v1554_v12 = vpack.c.bf16 %v222_v30, %v215_v29  ;;  %v236_v20 = vand.u32 4294901760, %v235_v44  ;;  %v1576_v38 = vpack.c.bf16 %v1488_v50, %v1483_v49  ;;  %v1580_v39 = vpack.c.bf16 %v1507_v60, %v1502_v59 }
  0x1c   :  { %1170 = vmatpush3.bf16.msra.mxu0 %v1436_v37  ;;  %1074 = vmatpush3.bf16.msra.mxu1 %v1436_v37  ;;  %v1564_v47 = vpack.c.bf16 %v248_v35, %v241_v32  ;;  %v242_v48 = vsub.f32 %v240_v14, %v241_v32  ;;  %v249_v51 = vsub.f32 %v247_v31, %v248_v35 }
  0x1d   :  { %1172 = vmatprep.subr.bf16.mxu0 %v1444_v40  ;;  %1076 = vmatprep.subr.bf16.mxu1 %v1444_v40  ;;  %v1566_v53 = vpack.c.bf16 %v236_v20, %v229_v45  ;;  %v1582_v23 = vpack.c.bf16 %v191_v4, %v184_v3  ;;  %v1584_v25 = vpack.c.bf16 %v205_v18, %v198_v17 }
  0x1e   :  { %v243_v57 = vand.u32 4294901760, %v242_v48  ;;  %v250_v58 = vand.u32 4294901760, %v249_v51  ;;  %v1586_v61 = vpack.c.bf16 %v219_v22, %v212_v54  ;;  %v1588_v63 = vpack.c.bf16 %v233_v28, %v226_v7 }
  0x1f   :  { %v1590_v1 = vpack.c.bf16 %v247_v31, %v240_v14 }
  0x20   :  { %1174 = vmatpush3.bf16.msra.mxu0 %v1444_v40  ;;  %1078 = vmatpush3.bf16.msra.mxu1 %v1444_v40  ;;  %v1568_v33 = vpack.c.bf16 %v250_v58, %v243_v57 }
  0x21   :  { %1176 = vmatprep.subr.bf16.mxu0 %v1456_v41  ;;  %1080 = vmatprep.subr.bf16.mxu1 %v1456_v41 }
  0x24   :  { %1178 = vmatpush3.bf16.msra.mxu0 %v1456_v41  ;;  %1082 = vmatpush3.bf16.msra.mxu1 %v1456_v41 }
  0x25   :  { %1180 = vmatprep.subr.bf16.mxu0 %v1476_v46  ;;  %1084 = vmatprep.subr.bf16.mxu1 %v1493_v55 }
  0x8f   :  { %v14_v42 = vpop.xlane.xlu0 %13 }
  0x90   :  { %v17_v43 = vsub.f32 %v1279_v0, %v14_v42 }
  0x92   :  { %v19_v29 = vmul.f32 1.442695, %v17_v43 }
  0x93   :  { %v16_v49 = vpop.xlane.xlu0 %15 }
  0x94   :  { %1253 = vpow2.f32 %v19_v29  ;;  %v18_v50 = vsub.f32 %v1306_v6, %v16_v49 }
  0x96   :  { %v21_v59 = vmul.f32 1.442695, %v18_v50 }
  0x98   :  { %1255 = vpow2.f32 %v21_v59 }
  0x9e   :  { %v1594_v60 = vpop.eup %1253 }
  0x9f   :  { %v120_v3 = vand.u32 4294901760, %v1594_v60 }
  0xa1   :  { %v121_v4 = vsub.f32 %v1594_v60, %v120_v3 }
  0xa2   :  { %v1598_v17 = vpop.eup %1255 }
  0xa3   :  { %v122_v18 = vand.u32 4294901760, %v121_v4  ;;  %v1601_v54 = vand.u32 4294901760, %v1598_v17 }
  0xa5   :  { %978 = vmatprep.mubr.f32.mxu0 %v122_v18  ;;  %v123_v0 = vsub.f32 %v121_v4, %v122_v18  ;;  %v1605_v22 = vsub.f32 %v1598_v17, %v1601_v54 }
  0xa7   :  { %v124_v6 = vand.u32 4294901760, %v123_v0  ;;  %v132_v7 = vand.u32 4294901760, %v1605_v22 }
  0xa9   :  { %873 = vmatprep.mubr.f32.mxu1 %v124_v6  ;;  %979 = vmatmul.mubr.f32.vlgmr.msra.gmra.mrb[0].mxu0 %v132_v7  ;;  %v133_v28 = vsub.f32 %v1605_v22, %v132_v7 }
  0xaa   :  { %1182 = vmatpush3.bf16.msra.mxu0 %v1476_v46  ;;  %1013 = vmatprep.mubr.f32.mxu0 %v120_v3 }
  0xab   :  { %1184 = vmatprep.subr.bf16.mxu0 %v1495_v56  ;;  %v134_v30 = vand.u32 4294901760, %v133_v28 }
  0xad   :  { %874 = vmatmul.mubr.f32.vlgmr.msra.gmra.mrb[0].mxu1 %v134_v30 }
  0xae   :  { %1086 = vmatpush3.bf16.msra.mxu1 %v1493_v55  ;;  %1186 = vmatpush3.bf16.msra.mxu0 %v1495_v56 }
  0xaf   :  { %908 = vmatprep.mubr.f32.mxu1 %v120_v3  ;;  %1088 = vmatprep.subr.bf16.mxu1 %v1512_v2 }
  0xb0   :  { %1188 = vmatprep.subr.bf16.mxu0 %v1520_v5 }
  0xb2   :  { %1090 = vmatpush3.bf16.msra.mxu1 %v1512_v2  ;;  %1190 = vmatpush3.bf16.msra.mxu0 %v1520_v5 }
  0xb3   :  { %1092 = vmatprep.subr.bf16.mxu1 %v1529_v19  ;;  %1192 = vmatprep.subr.bf16.mxu0 %v1524_v15 }
  0xb6   :  { %1094 = vmatpush3.bf16.msra.mxu1 %v1529_v19  ;;  %1194 = vmatpush3.bf16.msra.mxu0 %v1524_v15 }
  0xb7   :  { %1096 = vmatprep.subr.bf16.mxu1 %v1534_v52  ;;  %1196 = vmatprep.subr.bf16.mxu0 %v1542_v24 }
  0xba   :  { %1098 = vmatpush3.bf16.msra.mxu1 %v1534_v52  ;;  %1198 = vmatpush3.bf16.msra.mxu0 %v1542_v24 }
  0xbb   :  { %1100 = vmatprep.subr.bf16.mxu1 %v1549_v27  ;;  %1200 = vmatprep.subr.bf16.mxu0 %v1544_v62 }
  0xbe   :  { %1102 = vmatpush3.bf16.msra.mxu1 %v1549_v27  ;;  %1202 = vmatpush3.bf16.msra.mxu0 %v1544_v62 }
  0xbf   :  { %1104 = vmatprep.subr.bf16.mxu1 %v1554_v12  ;;  %1204 = vmatprep.subr.bf16.mxu0 %v1562_v34 }
  0xc2   :  { %1106 = vmatpush3.bf16.msra.mxu1 %v1554_v12  ;;  %1206 = vmatpush3.bf16.msra.mxu0 %v1562_v34 }
  0xc3   :  { %1108 = vmatprep.subr.bf16.mxu1 %v1566_v53  ;;  %1208 = vmatprep.subr.bf16.mxu0 %v1564_v47 }
  0xc6   :  { %1110 = vmatpush3.bf16.msra.mxu1 %v1566_v53  ;;  %1210 = vmatpush3.bf16.msra.mxu0 %v1564_v47 }
  0xc7   :  { %1112 = vmatprep.subr.bf16.mxu1 %v1568_v33  ;;  %1212 = vmatprep.subr.bf16.mxu0 %v1315_v10 }
  0xc9   :  { %1014 = vmatmul.mubr.f32.vlgmr.msra.gmra.mrb[0].mxu0 %v1601_v54 }
  0xca   :  { %1114 = vmatpush3.bf16.msra.mxu1 %v1568_v33  ;;  %1214 = vmatpush3.bf16.msra.mxu0 %v1315_v10 }
  0xcb   :  { %1048 = vmatprep.mubr.f32.mxu0 %v120_v3  ;;  %1116 = vmatprep.subr.bf16.mxu1 %v1572_v36 }
  0xcc   :  { %1216 = vmatprep.subr.bf16.mxu0 %v1321_v11 }
  0xcd   :  { %909 = vmatmul.mubr.f32.vlgmr.msra.gmra.mrb[0].mxu1 %v1601_v54 }
  0xce   :  { %1118 = vmatpush3.bf16.msra.mxu1 %v1572_v36  ;;  %943 = vmatprep.mubr.f32.mxu1 %v121_v4 }
  0xcf   :  { %1218 = vmatpush3.bf16.msra.mxu0 %v1321_v11  ;;  %1120 = vmatprep.subr.bf16.mxu1 %v1576_v38 }
  0xd0   :  { %1220 = vmatprep.subr.bf16.mxu0 %v1348_v16 }
  0xd2   :  { %1122 = vmatpush3.bf16.msra.mxu1 %v1576_v38 }
  0xd3   :  { %1222 = vmatpush3.bf16.msra.mxu0 %v1348_v16  ;;  %1124 = vmatprep.subr.bf16.mxu1 %v1580_v39 }
  0xd4   :  { %1224 = vmatprep.subr.bf16.mxu0 %v1370_v21 }
  0xd6   :  { %1126 = vmatpush3.bf16.msra.mxu1 %v1580_v39 }
  0xd7   :  { %1226 = vmatpush3.bf16.msra.mxu0 %v1370_v21  ;;  %1128 = vmatprep.subr.bf16.mxu1 %v1582_v23 }
  0xd8   :  { %1228 = vmatprep.subr.bf16.mxu0 %v1392_v26 }
  0xda   :  { %1130 = vmatpush3.bf16.msra.mxu1 %v1582_v23 }
  0xdb   :  { %1230 = vmatpush3.bf16.msra.mxu0 %v1392_v26  ;;  %1132 = vmatprep.subr.bf16.mxu1 %v1584_v25 }
  0xdc   :  { %1232 = vmatprep.subr.bf16.mxu0 %v1436_v37 }
  0xde   :  { %1134 = vmatpush3.bf16.msra.mxu1 %v1584_v25 }
  0xdf   :  { %1234 = vmatpush3.bf16.msra.mxu0 %v1436_v37  ;;  %1136 = vmatprep.subr.bf16.mxu1 %v1586_v61 }
  0xe0   :  { %1236 = vmatprep.subr.bf16.mxu0 %v1444_v40 }
  0xe2   :  { %1138 = vmatpush3.bf16.msra.mxu1 %v1586_v61 }
  0xe3   :  { %1238 = vmatpush3.bf16.msra.mxu0 %v1444_v40  ;;  %1140 = vmatprep.subr.bf16.mxu1 %v1588_v63 }
  0xe4   :  { %1240 = vmatprep.subr.bf16.mxu0 %v1456_v41 }
  0xe6   :  { %1142 = vmatpush3.bf16.msra.mxu1 %v1588_v63 }
  0xe7   :  { %1242 = vmatpush3.bf16.msra.mxu0 %v1456_v41  ;;  %1144 = vmatprep.subr.bf16.mxu1 %v1590_v1 }
  0xea   :  { %1049 = vmatmul.mubr.f32.vlgmr.msra.gmra.mrb[0].mxu0 %v1601_v54  ;;  %1146 = vmatpush3.bf16.msra.mxu1 %v1590_v1 }
  0xed   :  { %944 = vmatmul.mubr.f32.vlgmr.msra.gmra.mrb[0].mxu1 %v1605_v22 }
 0x1bd   :  { %v1050_v10 = vpop.f32.mrb[0].mxu0 }
 0x1be   :  { %v713_v11 = vpop.f32.mrb[1].mxu0 }
 0x1c0   :  { %v945_v16 = vpop.f32.mrb[0].mxu1 }
 0x1c1   :  { %v1243_v21 = vadd.f32 %v1050_v10, %v945_v16  ;;  %v397_v26 = vpop.f32.mrb[1].mxu1 }
 0x1c2   :  { %v1244_v37 = vadd.f32 %v713_v11, %v397_v26 }
 0x1c3   :  { %1257 = vrcp.f32 %v1243_v21 }
 0x1c4   :  { %1259 = vrcp.f32 %v1244_v37 }
 0x1cd   :  { %v1258_v40 = vpop.eup %1257 }
 0x1ce   :  { %v1260_v46 = vpop.eup %1259  ;;  %v726_v41 = vmul.f32 %v1258_v40, %v1598_v17 }
 0x1cf   :  { %v725_v55 = vmul.f32 %v1260_v46, %v1594_v60 }
 0x1d0   :  { %728 = vst [vmem:[%s1685_s2 + $0x8] sm:$0xff] %v726_v41 }
 0x1d1   :  { %727 = vst [vmem:[%s1685_s2] sm:$0xff] %v725_v55 }

</bundles_post_ra>
